<compile_context>
chip_gen: v5e
topology: v5e:2x2
jax: 0.10.0
libtpu: 0.0.40
codegen_flags: <defaults>
</compile_context>

<pallas_src>
import math

import jax
import jax.numpy as jnp
from jax.experimental import pallas as pl
from jax.experimental.pallas import tpu as pltpu


_HALF_PI = math.pi / 2.0


def _round_up(x, m):
    return ((x + m - 1) // m) * m


def _make_kernel(k):
    """k: static python int (number of Sobolev expansion terms)."""

    def kernel(x_ref, w_ref, out_ref, l2_ref):
        x = x_ref[...]                                   # (d, TN) feature-major
        t = x * _HALF_PI                                 # theta = pi*x/2
        s1 = jnp.sin(t)                                  # only EUP transcendental
        psis = [s1]
        if k >= 2:
            c2 = 1.0 - 2.0 * (s1 * s1)                   # cos(pi*x), VALU only
            two_c2 = 2.0 * c2
            b_prev, b = s1, two_c2 * s1 + s1             # sin(3t); b_{-1} = -sin(t)
            psis.append(b)
            for _ in range(2, k):
                b_prev, b = b, two_c2 * b - b_prev       # sin((2kk+1)t)
                psis.append(b)
        # Sublane-axis stack -> (k*d, TN); mu_kk already folded into w_ref.
        bases_t = psis[0] if k == 1 else jnp.concatenate(psis, axis=0)
        # Single MXU matmul: out^T = W_fused (d, k*d) @ bases^T (k*d, TN).
        y = jnp.dot(w_ref[...], bases_t,
                    preferred_element_type=jnp.float32)  # (d, TN)
        out_ref[...] = y
        # Lane-dense per-tile partial of sum(out**2); reduced in the wrapper.
        l2_ref[...] = jnp.sum(y * y, axis=0, keepdims=True)[None, :, :]

    return kernel


def notears_sobolev_forward(x, w_pos, w_neg, k, *, tile_n=None):
    """x: [n, d] f32.  w_pos/w_neg: [d, d*k] f32 (PyTorch Linear layout)."""
    n, d = x.shape
    assert w_pos.shape == (d, d * k) and w_neg.shape == (d, d * k)

    # ---- one-time weight glue (plain JAX, outside the hot loop) -------------
    # PyTorch layout: Wd[o, j*k + kk].  Fold mu_kk in and reorder columns to
    # kk*d + j so they match the kernel's sublane-stacked bases^T rows.
    mus = jnp.asarray([2.0 / ((2 * kk + 1) * math.pi) for kk in range(k)],
                      dtype=jnp.float32)
    wd = (w_pos - w_neg).astype(jnp.float32).reshape(d, d, k)    # [o, j, kk]
    wd = wd * mus[None, None, :]                                 # fold mu_kk
    w_fused = jnp.transpose(wd, (0, 2, 1)).reshape(d, k * d)     # col = kk*d + j

    # ---- generation-aware VMEM budget & batch-tile sizing --------------------
    try:
        vmem_cap = int(pltpu.get_tpu_info().vmem_capacity_bytes)
    except Exception:
        vmem_cap = 64 * 1024 * 1024        # conservative (v7x-sized) fallback
    budget = min(int(vmem_cap * 3 // 4), 96 * 1024 * 1024)

    d_sub = _round_up(d, 8)                # sublane padding of d-row blocks
    kd_sub = _round_up(k * d, 8)
    kd_lane = _round_up(k * d, 128)
    resident = 2 * d_sub * kd_lane * 4     # resident fused weights (dbl-buffered)
    per_col = 4 * (2 * d_sub              # x^T tile, double-buffered
                   + 2 * d_sub            # out^T tile, double-buffered
                   + 2 * 8                # l2 tile (sublane-padded), dbl-buffered
                   + kd_sub               # bases^T intermediate
                   + k * d_sub            # psi intermediates
                   + 4 * d_sub)           # t, s1, c2, y temporaries
    tn = (max(budget - resident, 0) // per_col // 128) * 128
    tn = int(max(128, min(tn, 16384)))
    if tile_n is not None:
        tn = min(tn, max(128, _round_up(int(tile_n), 128)))
    # Prefer >= 2 batch tiles so both v7x TensorCores get work (harmless on
    # 1-TC chips where the "parallel" axis just becomes a short loop).
    if n > 128:
        tn = min(tn, _round_up(pl.cdiv(n, 2), 128))

    n_pad = _round_up(n, tn)
    num_tiles = n_pad // tn

    # Feature-major input: x^T, zero-padded batch columns (sin(0)=0 -> padded
    # columns contribute exactly 0 to out and l2).
    x_t = jnp.pad(x.astype(jnp.float32).T, ((0, 0), (0, n_pad - n)))

    kernel = _make_kernel(k)

    out_t, l2_parts = pl.pallas_call(
        kernel,
        grid=(num_tiles,),
        in_specs=[
            pl.BlockSpec((d, tn), lambda i: (0, i)),        # streamed x^T tiles
            pl.BlockSpec((d, k * d), lambda i: (0, 0)),     # resident fused weights
        ],
        out_specs=(
            pl.BlockSpec((d, tn), lambda i: (0, i)),        # streamed out^T tiles
            pl.BlockSpec((1, 1, tn), lambda i: (i, 0, 0)),  # per-tile l2 partials
        ),
        out_shape=(
            jax.ShapeDtypeStruct((d, n_pad), jnp.float32),
            jax.ShapeDtypeStruct((num_tiles, 1, tn), jnp.float32),
        ),
        compiler_params=pltpu.CompilerParams(
            dimension_semantics=("parallel",),
            vmem_limit_bytes=int(budget),
        ),
    )(x_t, w_fused)

    out = out_t[:, :n].T                   # (n, d): only n*d*4 B of extra traffic
    l2 = jnp.sum(l2_parts) / n
    return out, l2


def _reference_forward(x, w_pos, w_neg, k):
    """Pure-JAX reference mirroring the PyTorch module exactly."""
    n, d = x.shape
    seq = []
    for kk in range(k):
        mu = 2.0 / (2 * kk + 1) / math.pi
        seq.append(mu * jnp.sin(x / mu))                        # (n, d)
    bases = jnp.stack(seq, axis=2).reshape(n, d * k)            # (n, d*k)
    out = bases @ (w_pos - w_neg).T                             # (n, d)
    l2 = jnp.sum(out ** 2) / n
    return out, l2


if __name__ == "__main__":
    d, k, n = 8, 4, 200   # n deliberately not a multiple of the tile size

    key = jax.random.PRNGKey(0)
    kx, kp, kn_ = jax.random.split(key, 3)

    x = jax.random.normal(kx, (n, d), dtype=jnp.float32)

    # Module __init__ zeros the weights (forward would be trivially zero);
    # use deterministic non-negative random weights consistent with the
    # module's (0, None) bounds for a non-trivial test.
    w_pos = 0.1 * jax.random.uniform(kp, (d, d * k), dtype=jnp.float32)
    w_neg = 0.1 * jax.random.uniform(kn_, (d, d * k), dtype=jnp.float32)

    # tile_n=128 -> two 128-column batch tiles (row padding on the last one),
    # exercising multiple grid steps and the batch-padding path.
    out, l2 = notears_sobolev_forward(x, w_pos, w_neg, k, tile_n=128)
    out = jax.block_until_ready(out)
    l2 = jax.block_until_ready(l2)

    ref_out, ref_l2 = _reference_forward(x, w_pos, w_neg, k)
    assert out.shape == (n, d), "output shape mismatch"
    assert jnp.allclose(out, ref_out, atol=1e-5, rtol=1e-5), "output mismatch"
    assert jnp.allclose(l2, ref_l2, atol=1e-5, rtol=1e-4), "l2 reg mismatch"

    print("KERNEL_OK")
</pallas_src>

<mosaic_0001>
module attributes {stable_mosaic.version = 11 : i64} {
  func.func @kernel(%arg0: i32, %arg1: memref<8x128xf32, #tpu.memory_space<vmem>>, %arg2: memref<8x32xf32, #tpu.memory_space<vmem>>, %arg3: memref<8x128xf32, #tpu.memory_space<vmem>>, %arg4: memref<1x1x128xf32, #tpu.memory_space<vmem>>) attributes {dimension_semantics = [#tpu.dimension_semantics<parallel>], iteration_bounds = array<i64: 2>, scalar_prefetch = 0 : i64, scratch_operands = 0 : i64, tpu.core_type = #tpu.core_type<tc>, window_params = [{transform_indices = @transform_0, window_bounds = array<i64: 8, 128>}, {pipeline_mode = #tpu.pipeline_mode<synchronous>, transform_indices = @transform_1, window_bounds = array<i64: 8, 32>}, {transform_indices = @transform_2, window_bounds = array<i64: 8, 128>}, {transform_indices = @transform_3, window_bounds = array<i64: 1, 1, 128>}]} {
    %c0 = arith.constant 0 : index
    %c0_0 = arith.constant 0 : index
    %0 = vector.load %arg1[%c0, %c0_0] : memref<8x128xf32, #tpu.memory_space<vmem>>, vector<8x128xf32>
    %cst = arith.constant 1.57079637 : f32
    %1 = vector.broadcast %cst : f32 to vector<8x128xf32>
    %2 = arith.mulf %0, %1 : vector<8x128xf32>
    %3 = math.sin %2 : vector<8x128xf32>
    %4 = arith.mulf %3, %3 : vector<8x128xf32>
    %cst_1 = arith.constant 2.000000e+00 : f32
    %5 = vector.broadcast %cst_1 : f32 to vector<8x128xf32>
    %6 = arith.mulf %5, %4 : vector<8x128xf32>
    %cst_2 = arith.constant 1.000000e+00 : f32
    %7 = vector.broadcast %cst_2 : f32 to vector<8x128xf32>
    %8 = arith.subf %7, %6 : vector<8x128xf32>
    %cst_3 = arith.constant 2.000000e+00 : f32
    %9 = vector.broadcast %cst_3 : f32 to vector<8x128xf32>
    %10 = arith.mulf %9, %8 : vector<8x128xf32>
    %11 = arith.mulf %10, %3 : vector<8x128xf32>
    %12 = arith.addf %11, %3 : vector<8x128xf32>
    %13 = arith.mulf %10, %12 : vector<8x128xf32>
    %14 = arith.subf %13, %3 : vector<8x128xf32>
    %15 = arith.mulf %10, %14 : vector<8x128xf32>
    %16 = arith.subf %15, %12 : vector<8x128xf32>
    %17 = tpu.concatenate %3, %12, %14, %16 in 0 : vector<8x128xf32>, vector<8x128xf32>, vector<8x128xf32>, vector<8x128xf32> -> vector<32x128xf32>
    %c0_4 = arith.constant 0 : index
    %c0_5 = arith.constant 0 : index
    %18 = vector.load %arg2[%c0_4, %c0_5] : memref<8x32xf32, #tpu.memory_space<vmem>>, vector<8x32xf32>
    %cst_6 = arith.constant dense<0.000000e+00> : vector<8x128xf32>
    %19 = tpu.matmul %18, %17, %cst_6 {dimension_numbers = #tpu.dot_dimension_numbers<[1], [0], [0], [1], [0, 0, 1, 1], [], []>} : vector<8x32xf32>, vector<32x128xf32>, vector<8x128xf32> -> vector<8x128xf32>
    %c0_7 = arith.constant 0 : index
    %c0_8 = arith.constant 0 : index
    %20 = vector.load %arg3[%c0_7, %c0_8] : memref<8x128xf32, #tpu.memory_space<vmem>>, vector<8x128xf32>
    tpu.vector_store %arg3[%c0_7, %c0_8], %19 {strides = array<i32>} : memref<8x128xf32, #tpu.memory_space<vmem>>, vector<8x128xf32>,
    %21 = arith.mulf %19, %19 : vector<8x128xf32>
    %cst_9 = arith.constant dense<0.000000e+00> : vector<128xf32>
    %22 = vector.multi_reduction <add>, %21, %cst_9 [0] : vector<8x128xf32> to vector<128xf32>
    %23 = vector.shape_cast %22 : vector<128xf32> to vector<1x128xf32>
    %24 = vector.shape_cast %23 : vector<1x128xf32> to vector<1x1x128xf32>
    %c0_10 = arith.constant 0 : index
    %c0_11 = arith.constant 0 : index
    %c0_12 = arith.constant 0 : index
    %25 = vector.load %arg4[%c0_10, %c0_11, %c0_12] : memref<1x1x128xf32, #tpu.memory_space<vmem>>, vector<1x1x128xf32>
    tpu.vector_store %arg4[%c0_10, %c0_11, %c0_12], %24 {strides = array<i32>} : memref<1x1x128xf32, #tpu.memory_space<vmem>>, vector<1x1x128xf32>,
    return
  }
  func.func @transform_0(%arg0: i32) -> (i32, i32) {
    %c0_i32 = arith.constant 0 : i32
    %c0_i32_0 = arith.constant 0 : i32
    return %c0_i32, %arg0 : i32, i32
  }
  func.func @transform_1(%arg0: i32) -> (i32, i32) {
    %c0_i32 = arith.constant 0 : i32
    %c0_i32_0 = arith.constant 0 : i32
    %c0_i32_1 = arith.constant 0 : i32
    return %c0_i32, %c0_i32_0 : i32, i32
  }
  func.func @transform_2(%arg0: i32) -> (i32, i32) {
    %c0_i32 = arith.constant 0 : i32
    %c0_i32_0 = arith.constant 0 : i32
    return %c0_i32, %arg0 : i32, i32
  }
  func.func @transform_3(%arg0: i32) -> (i32, i32, i32) {
    %c0_i32 = arith.constant 0 : i32
    %c0_i32_0 = arith.constant 0 : i32
    %c0_i32_1 = arith.constant 0 : i32
    return %arg0, %c0_i32, %c0_i32_0 : i32, i32, i32
  }
}

</mosaic_0001>

<bundles_post_ra>
// kernel: tpu_custom_call.1
= control target key start
LH: loop header
LB: loop body
LE: loop exit
PB: predicated region body
PF: predicated region fallthrough
CT: control target
= control target key end

     0   :  { %9 = vsyncpa [#allocation3], 0  ;;  %s1038_s0 = inlined_call_operand.hbm [shape: f32[8,256], index: 0, kind: input, shape index: {}]   ;;  %s1039_s1 = inlined_call_operand.hbm [shape: f32[8,32], index: 1, kind: input, shape index: {}]   ;;  %s1040_s2 = inlined_call_operand.hbm [shape: f32[8,256], index: 2, kind: output, shape index: {0}]   ;;  %s1041_s3 = inlined_call_operand.hbm [shape: f32[2,1,128], index: 3, kind: output, shape index: {1}]  }
   0x1   :  { %11 = vsyncpa [#allocation3 + $0x1], 0 }
   0x2   :  { %12 = vsyncpa [#allocation6], 0 }
   0x3   :  { %13 = vsyncpa [#allocation4], 0 }
   0x4   :  { %15 = vsyncpa [#allocation4 + $0x1], 0 }
   0x5   :  { %16 = vsyncpa [#allocation9], 0 }
   0x6   :  { %18 = vsyncpa [#allocation9 + $0x1], 0  ;;  %s834_s12 = smov 0   ;;  %s836_s13 = smov 0  }
   0x7   :  { %s838_s14 = smov 0   ;;  %s840_s15 = smov 0  }
   0x8 LB: > { %s855_s16 = sadd.s32 4294967295, %s804_s15   ;;  %s555_s17 = sadd.s32 4294967294, %s804_s15   ;;  %s804_s15 = sphi %s840_s15, %s1051_s15   ;;  %s800_s14 = sphi %s838_s14, %s1050_s14   ;;  %s796_s13 = sphi %s836_s13, %s1049_s13   ;;  %s792_s12 = sphi %s834_s12, %s1048_s12  }
   0x9   : > { %p44_p0 = scmp.ne.s32.totalorder %s796_s13, %s792_s12  ;;  %p45_p1 = scmp.eq.s32.totalorder %s855_s16, 0 }
   0xa   : > { %p89_p2 = scmp.eq.s32.totalorder %s855_s16, 1  ;;  %p95_p3 = scmp.eq.s32.totalorder %s555_s17, 1 }
   0xb   : > { %p864_p4 = por %p45_p1, %p44_p0  ;;  %p556_p5 = scmp.ge.s32.totalorder %s804_s15, 1 }
   0xc   : > { %p869_p6 = por %p95_p3, %p44_p0  ;;  %p128_p7 = scmp.lt.s32.totalorder %s804_s15, 3 }
   0xd   : > { %s140_s22 = sshll.u32 %s1039_s1, 4  ;;  %s806_s24 = smov [#allocation5]   ;;  %s141_s22 = int_to_ptr.hbm [resolvable:$true] %s140_s22 }
   0xe   : > { %p877_p8 = pnand %p556_p5, %p128_p7  ;;  %s142_s25 = sshll.u32 %s806_s24, 4  ;;  %s143_s25 = int_to_ptr.vmem [resolvable:$true] %s142_s25 }
   0xf   : > { %s887_s26 = sadd.s32 1, %s804_s15   ;;  %s31_s27 = sadd.s32 1, %s800_s14 }
  0x10   : > { %p583_p10 = pneg %p877_p8  ;;  %s28_s28 = ssub.s32 %s804_s15, %s887_s26 }
  0x11   : > { %p29_p12 = scmp.eq.s32.totalorder %s28_s28, 0  ;;  %p38_p13 = scmp.ne.s32.totalorder %s800_s14, %s796_s13 }
  0x12   : > { %p584_p11 = pnand %p583_p10, %p45_p1  ;;  %p39_p0 = scmp.eq.s32.totalorder %s804_s15, 0 }
  0x13   : > { %s896_s29 = scalar_select %p29_p12, %s800_s14, %s31_s27  }
  0x14   : > { %586 = dma.hbm_to_vmem [thread:$0]  (!%p584_p11), %s141_s22, 128, %s143_s25, [#allocation6]  }
  0x15   : > { %p900_p3 = por %p89_p2, %p38_p13  ;;  %p599_p5 = scmp.lt.s32.totalorder %s804_s15, 2 }
  0x16   : > { %s153_s4 = sand.u32 1, %s800_s14   ;;  %s560_s5 = sshll.u32 %s804_s15, 3 }
  0x17   : > { %p40_p7 = por %p39_p0, %p38_p13  ;;  %s559_s6 = sshll.u32 %s153_s4, 3 }
  0x18   : > { %s161_s9 = scalar_lea.hbm %s1038_s0, %s560_s5  ;;  %s157_s11 = scalar_lea.vmem [#allocation2], %s559_s6 }
  0x19   : > { %s163_s10 = sshll.u32 %s161_s9, 4  ;;  %s165_s17 = sshll.u32 %s157_s11, 4  ;;  %s164_s10 = int_to_ptr.hbm [resolvable:$true] %s163_s10  ;;  %s166_s17 = int_to_ptr.vmem [resolvable:$true] %s165_s17 }
  0x1a   : > { %p910_p10 = pnand %p599_p5, %p40_p7  ;;  %s154_s21 = scalar_lea.sflag [#allocation3], %s153_s4 }
  0x1b   : > { %s672_s22 = sshra.s32 %s164_s10, 4  ;;  %s679_s28 = scalar_lea.hbm %s1038_s0, 16  ;;  %s673_s22 = int_to_ptr.hbm [resolvable:$true] %s672_s22 }
  0x1c   : > { %s674_s24 = scalar_lea.hbm %s673_s22, 8  ;;  %p676_p11 = pneg %p910_p10 }
  0x1d   : > { %p675_p2 = scmp.ne.s32.totalorder %s673_s22, %s674_s24  ;;  %p680_p0 = scmp.lt.s32.totalorder %s673_s22, %s1038_s0 }
  0x1e   : > { %p681_p5 = scmp.lt.s32.totalorder %s679_s28, %s674_s24 }
  0x1f   : > { %p677_p12 = pnand %p676_p11, %p675_p2 }
  0x20   : > { %p682_p7 = por %p681_p5, %p680_p0 }
  0x21   : > { %p678_p13 = pneg %p677_p12 }
  0x23   : > { %p683_p9 = pnand %p682_p7, %p678_p13 }
  0x25   : > { %686 = shalt.err (!%p683_p9)
}
  0x26   : > { %590 = dma.hbm_to_vmem [thread:$0]  (!%p910_p10), %s164_s10, 128, %s166_s17, %s154_s21  }
  0x27   : > { %174 = sbr.rel (%p877_p8) target bundleno = 316 (0x13c), region = 28  ;;  %s927_s4 = sand.u32 (!%p877_p8), 1, %s796_s13  }
  0x28   : > { %s562_s7 = sshll.u32 (!%p877_p8), %s927_s4, 3  ;;  %s177_s8 = scalar_lea.sflag (!%p877_p8), [#allocation3], %s927_s4 }
  0x29   : > { %s180_s9 = scalar_lea.vmem (!%p877_p8), [#allocation2], %s562_s7 }
  0x2c   : > { %775 = dma.done.wait (%p864_p4), %s177_s8, 128  }
  0x2d   : > { %777 = vsyncadd (%p864_p4), %s177_s8, 4294967168 }
  0x2e   : > { %779 = dma.done.wait (%p45_p1), [#allocation6], 128  }
  0x2f   : > { %781 = vsyncadd (%p45_p1), [#allocation6], 4294967168  ;;  %v213_v0 = vld [vmem:[%s180_s9] sm:$0xff]  ;;  %v807_v13 = vmov 683565275   ;;  %s570_s18 = sshll.u32 %s855_s16, 3 }
  0x30   : > { %v941_v1 = vmul.f32 1.5707964, %v213_v0  ;;  %v808_v15 = vmov 2475754826   ;;  %v809_v17 = vmov 2131351028   ;;  %s429_s11 = scalar_lea.hbm %s1040_s2, %s570_s18 }
  0x31   : > { %v810_v19 = vmov 2102212464   ;;  %v811_v21 = vmov 920167782   ;;  %v812_v27 = vmov 1326507024  }
  0x32   : > { %v218_v2 = vand.u32 2139095040, %v941_v1  ;;  %v215_v4 = vand.u32 2147483647, %v941_v1  ;;  %vm217_vm12 = vcmp.lt.s32.totalorder %v941_v1, 0  ;;  %s206_s17 = scalar_lea.vmem [#allocation7], %s562_s7  ;;  %s433_s21 = sshll.u32 %s429_s11, 4  ;;  %s434_s21 = int_to_ptr.hbm [resolvable:$true] %s433_s21 }
  0x33   : > { %s431_s20 = sshll.u32 %s206_s17, 4  ;;  %s415_s22 = scalar_lea.sflag [#allocation4], %s927_s4  ;;  %s432_s20 = int_to_ptr.vmem [resolvable:$true] %s431_s20 }
  0x34   : > { %v219_v3 = vshrl.u32 %v218_v2, 23  ;;  %v222_v7 = vand.u32 8388607, %v215_v4  ;;  %v813_v2 = vmov 0   ;;  %vm216_vm13 = vcmp.le.f32.partialorder %v215_v4, 0.7853982 }
  0x35   : > { %s716_s24 = sshra.s32 %s434_s21, 4  ;;  %s722_s5 = scalar_lea.hbm %s1040_s2, 16  ;;  %s717_s24 = int_to_ptr.hbm [resolvable:$true] %s716_s24 }
  0x36   : > { %v565_v5 = vadd.s32 4294967169, %v219_v3  ;;  %v223_v10 = vor.u32 8388608, %v222_v7  ;;  %s718_s25 = scalar_lea.hbm %s717_s24, 8  ;;  %p723_p9 = scmp.lt.s32.totalorder %s717_s24, %s1040_s2 }
  0x37   : > { %p719_p1 = scmp.ne.s32.totalorder %s717_s24, %s718_s25  ;;  %p724_p10 = scmp.lt.s32.totalorder %s722_s5, %s718_s25 }
  0x38   : > { %v225_v6 = vadd.s32 1, %v565_v5  ;;  %v950_v29 = vshll.u32 %v223_v10, 8 }
  0x39   : > { %p720_p4 = pnand %p719_p1, %p900_p3  ;;  %p725_p2 = por %p724_p10, %p723_p9 }
  0x3a   : > { %vm226_vm0 = vcmp.gt.s32.totalorder %v225_v6, 0  ;;  %v264_v41 = vand.u32 65535, %v950_v29  ;;  %v265_v42 = vshrl.u32 %v950_v29, 16 }
  0x3b   : > { %v227_v8 = vsel %vm226_vm0, %v225_v6, 0  ;;  %p721_p8 = pneg %p720_p4 }
  0x3c   : > { %v229_v9 = vand.u32 31, %v227_v8  ;;  %v947_v11 = vshrl.u32 %v227_v8, 5 }
  0x3d   : > { %p726_p11 = pnand %p725_p2, %p721_p8 }
  0x3e   : > { %v230_v12 = vsub.s32 32, %v229_v9  ;;  %v232_v14 = vshll.u32 %v807_v13, %v229_v9  ;;  %v235_v16 = vshll.u32 %v808_v15, %v229_v9  ;;  %v238_v18 = vshll.u32 %v809_v17, %v229_v9 }
  0x3f   : > { %v241_v20 = vshll.u32 %v810_v19, %v229_v9  ;;  %v244_v22 = vshll.u32 %v811_v21, %v229_v9  ;;  %vm247_vm1 = vcmp.lt.s32.totalorder %v947_v11, 1  ;;  %vm250_vm2 = vcmp.lt.s32.totalorder %v947_v11, 4 }
  0x40   : > { %v233_v23 = vshrl.u32 %v808_v15, %v230_v12  ;;  %v236_v24 = vshrl.u32 %v809_v17, %v230_v12  ;;  %v239_v25 = vshrl.u32 %v810_v19, %v230_v12  ;;  %v242_v26 = vshrl.u32 %v811_v21, %v230_v12 }
  0x41   : > { %v245_v28 = vshrl.u32 %v812_v27, %v230_v12  ;;  %vm249_vm3 = vcmp.lt.s32.totalorder %v947_v11, 3  ;;  %vm248_vm4 = vcmp.lt.s32.totalorder %v947_v11, 2  ;;  %v231_v49 = vshrl.u32 %v807_v13, %v230_v12 }
  0x42   : > { %v234_v30 = vor.u32 %v233_v23, %v232_v14  ;;  %v237_v31 = vor.u32 %v236_v24, %v235_v16  ;;  %v240_v32 = vor.u32 %v239_v25, %v238_v18  ;;  %v243_v33 = vor.u32 %v242_v26, %v241_v20 }
  0x43   : > { %v246_v34 = vor.u32 %v245_v28, %v244_v22 }
  0x44   : > { %v255_v35 = vsel %vm247_vm1, %v234_v30, %v237_v31  ;;  %v259_v36 = vsel %vm247_vm1, %v237_v31, %v240_v32  ;;  %v256_v37 = vsel %vm250_vm2, %v243_v33, 920167782  ;;  %v251_v62 = vsel %vm247_vm1, %v231_v49, %v234_v30 }
  0x45   : > { %v260_v38 = vsel %vm250_vm2, %v246_v34, 1326507024  ;;  %v257_v39 = vsel %vm249_vm3, %v240_v32, %v256_v37  ;;  %v252_v0 = vsel %vm250_vm2, %v240_v32, 2102212464  ;;  %vm358_vm1 = vweird.f32 %v941_v1 }
  0x46   : > { %v261_v40 = vsel %vm249_vm3, %v243_v33, %v260_v38  ;;  %v258_v43 = vsel %vm248_vm4, %v255_v35, %v257_v39  ;;  %v253_v13 = vsel %vm249_vm3, %v237_v31, %v252_v0  ;;  %vm381_vm2 = vcmask 261120  }
  0x47   : > { %v262_v44 = vsel %vm248_vm4, %v259_v36, %v261_v40  ;;  %v288_v47 = vand.u32 65535, %v258_v43  ;;  %v289_v48 = vshrl.u32 %v258_v43, 16  ;;  %v254_v21 = vsel %vm248_vm4, %v251_v62, %v253_v13 }
  0x48   : > { %v266_v45 = vand.u32 65535, %v262_v44  ;;  %v267_v46 = vshrl.u32 %v262_v44, 16  ;;  %v308_v25 = vmul.u32 %v950_v29, %v254_v21 }
  0x49   : > { %v290_v53 = vmul.u32 %v288_v47, %v264_v41  ;;  %v291_v54 = vmul.u32 %v289_v48, %v264_v41  ;;  %v292_v55 = vmul.u32 %v288_v47, %v265_v42  ;;  %v293_v59 = vmul.u32 %v289_v48, %v265_v42 }
  0x4a   : > { %v268_v50 = vmul.u32 %v266_v45, %v264_v41  ;;  %v269_v51 = vmul.u32 %v267_v46, %v264_v41  ;;  %v270_v52 = vmul.u32 %v266_v45, %v265_v42  ;;  %v271_v56 = vmul.u32 %v267_v46, %v265_v42 }
  0x4b   : > { %v294_v60 = vshll.u32 %v291_v54, 16  ;;  %v296_v61 = vshll.u32 %v292_v55, 16  ;;  %v295_v10 = vshrl.u32 %v291_v54, 16  ;;  %v297_v17 = vshrl.u32 %v292_v55, 16 }
  0x4c   : > { %v272_v57 = vshll.u32 %v269_v51, 16  ;;  %v274_v58 = vshll.u32 %v270_v52, 16  ;;  %v273_v6 = vshrl.u32 %v269_v51, 16  ;;  %v275_v14 = vshrl.u32 %v270_v52, 16 }
  0x4d   : > { %vm298_vm6 = vc.u32 %v290_v53, %v294_v60  ;;  %v300_v5 = vadd.s32 %v294_v60, %v290_v53 }
  0x4e   : > { %vm276_vm5 = vc.u32 %v268_v50, %v272_v57  ;;  %v278_v63 = vadd.s32 %v272_v57, %v268_v50  ;;  %v299_v8 = vsel %vm298_vm6, 1, %v813_v2 }
  0x4f   : > { %v277_v3 = vsel %vm276_vm5, 1, %v813_v2  ;;  %v301_v12 = vadd.s32 %v299_v8, %v293_v59  ;;  %vm302_vm8 = vc.u32 %v300_v5, %v296_v61  ;;  %v304_v20 = vadd.s32 %v300_v5, %v296_v61 }
  0x50   : > { %v279_v7 = vadd.s32 %v277_v3, %v271_v56  ;;  %vm280_vm7 = vc.u32 %v278_v63, %v274_v58  ;;  %v303_v16 = vsel %vm302_vm8, 1, %v813_v2 }
  0x51   : > { %v281_v9 = vsel %vm280_vm7, 1, %v813_v2  ;;  %v305_v18 = vadd.s32 %v303_v16, %v301_v12 }
  0x52   : > { %v283_v15 = vadd.s32 %v281_v9, %v279_v7 }
  0x53   : > { %v306_v22 = vadd.s32 %v305_v18, %v295_v10 }
  0x54   : > { %v284_v19 = vadd.s32 %v283_v15, %v273_v6 }
  0x55   : > { %v307_v24 = vadd.s32 %v306_v22, %v297_v17 }
  0x56   : > { %v285_v23 = vadd.s32 %v284_v19, %v275_v14 }
  0x57   : > { %v311_v26 = vadd.s32 1, %v307_v24 }
  0x58   : > { %vm310_vm9 = vc.u32 %v285_v23, %v304_v20  ;;  %v309_v11 = vadd.s32 %v304_v20, %v285_v23 }
  0x59   : > { %v312_v27 = vsel %vm310_vm9, %v311_v26, %v307_v24 }
  0x5a   : > { %v313_v28 = vadd.s32 %v312_v27, %v308_v25 }
  0x5c   : > { %v314_v30 = vadd.s32 536870912, %v313_v28 }
  0x5e   : > { %v315_v31 = vshrl.u32 %v314_v30, 30 }
  0x60   : > { %v316_v32 = vshll.u32 %v315_v31, 30  ;;  %v339_v49 = vsub.s32 4, %v315_v31 }
  0x62   : > { %v317_v33 = vsub.s32 %v313_v28, %v316_v32  ;;  %v340_v52 = vsel %vm217_vm12, %v339_v49, %v315_v31 }
  0x63   : > { %v342_v55 = vsel %vm216_vm13, 0, %v340_v52 }
  0x64   : > { %vm318_vm10 = vcmp.lt.s32.totalorder %v317_v33, 0  ;;  %v319_v34 = vsub.s32 0, %v317_v33  ;;  %v359_v60 = vadd.s32 3, %v342_v55 }
  0x66   : > { %v320_v35 = vsel %vm318_vm10, %v319_v34, %v317_v33  ;;  %v360_v2 = vand.u32 3, %v359_v60 }
  0x67   : > { %v321_v36 = vclz %v320_v35 }
  0x68   : > { %vm365_vm14 = vcmp.eq.s32.totalorder %v360_v2, 2  ;;  %vm362_vm15 = vcmp.eq.s32.totalorder %v360_v2, 0  ;;  %vm361_vm0 = vcmp.lt.s32.totalorder %v360_v2, 2 }
  0x69   : > { %v566_v37 = vadd.s32 4294967294, %v321_v36 }
  0x6b   : > { %vm567_vm11 = vcmp.lt.s32.totalorder %v566_v37, 0 }
  0x6c   : > { %v324_v38 = vsel %vm567_vm11, 0, %v566_v37 }
  0x6d   : > { %v325_v39 = vsub.s32 32, %v324_v38  ;;  %v326_v40 = vshll.u32 %v317_v33, %v324_v38  ;;  %v329_v41 = vsub.s32 4294967266, %v324_v38 }
  0x6f   : > { %v327_v29 = vshrl.u32 %v309_v11, %v325_v39  ;;  %v330_v42 = vadd.s32 127, %v329_v41 }
  0x71   : > { %v328_v43 = vor.u32 %v327_v29, %v326_v40  ;;  %v331_v44 = vshll.u32 %v330_v42, 23 }
  0x73   : > { %v332_v45 = vor.u32 4788187, %v331_v44  ;;  %v335_v46 = vcvt.s32.f32 %v328_v43 }
  0x75   : > { %v333_v47 = vand.u32 2147483647, %v332_v45 }
  0x77   : > { %v336_v48 = vmul.f32 %v335_v46, %v333_v47 }
  0x79   : > { %v337_v50 = vxor.u32 2147483648, %v336_v48 }
  0x7b   : > { %v338_v51 = vsel %vm217_vm12, %v337_v50, %v336_v48 }
  0x7c   : > { %v341_v53 = vsel %vm216_vm13, %v941_v1, %v338_v51  ;;  %v380_v1 = vld [vmem:[#allocation5] sm:$0xff] }
  0x7d   : > { %v343_v54 = vmul.f32 %v341_v53, %v341_v53 }
  0x7f   : > { %v344_v56 = vmul.f32 -0.001358992, %v343_v54  ;;  %v351_v57 = vmul.f32 -0.00019511016, %v343_v54 }
  0x81   : > { %v345_v58 = vadd.f32 0.041655596, %v344_v56  ;;  %v352_v59 = vadd.f32 0.008332121, %v351_v57 }
  0x83   : > { %v346_v61 = vmul.f32 %v345_v58, %v343_v54  ;;  %v353_v62 = vmul.f32 %v352_v59, %v343_v54 }
  0x85   : > { %v347_v63 = vadd.f32 -0.4999988, %v346_v61  ;;  %v354_v0 = vadd.f32 -0.16666654, %v353_v62 }
  0x87   : > { %v348_v3 = vmul.f32 %v347_v63, %v343_v54  ;;  %v355_v5 = vmul.f32 %v354_v0, %v343_v54 }
  0x89   : > { %v349_v4 = vadd.f32 1.0, %v348_v3  ;;  %v356_v6 = vadd.f32 1.0, %v355_v5 }
  0x8b   : > { %v357_v7 = vmul.f32 %v356_v6, %v341_v53  ;;  %v366_v8 = vxor.u32 2147483648, %v349_v4 }
  0x8d   : > { %v363_v9 = vxor.u32 2147483648, %v357_v7  ;;  %v367_v10 = vsel %vm365_vm14, %v366_v8, %v357_v7 }
  0x8f   : > { %v364_v12 = vsel %vm362_vm15, %v349_v4, %v363_v9 }
  0x90   : > { %v368_v13 = vsel %vm361_vm0, %v364_v12, %v367_v10 }
  0x91   : > { %v369_v14 = vsel %vm358_vm1, nan, %v368_v13 }
  0x92   : > { %v370_v15 = vmul.f32 %v369_v14, %v369_v14 }
  0x94   : > { %v371_v16 = vmul.f32 2.0, %v370_v15 }
  0x96   : > { %v372_v17 = vsub.f32 1.0, %v371_v16 }
  0x98   : > { %v373_v18 = vmul.f32 2.0, %v372_v17 }
  0x9a   : > { %v374_v19 = vmul.f32 %v373_v18, %v369_v14 }
  0x9c   : > { %v375_v20 = vadd.f32 %v374_v19, %v369_v14 }
  0x9e   : > { %v376_v21 = vmul.f32 %v375_v20, %v373_v18 }
  0xa0   : > { %v377_v22 = vsub.f32 %v376_v21, %v369_v14 }
  0xa2   : > { %v378_v23 = vmul.f32 %v377_v22, %v373_v18 }
  0xa4   : > { %v379_v24 = vsub.f32 %v378_v23, %v375_v20 }
  0xa6   : > { %397 = vmatpush.msra.mxu0 %v379_v24 }
  0xa8   : > { %398 = vmatpush.msra.mxu0 %v377_v22 }
  0xaa   : > { %399 = vmatpush.msra.mxu0 %v375_v20 }
  0xac   : > { %400 = vmatpush.msra.mxu0 %v369_v14 }
  0xad   : > { %568 = vmatmul.msk.f32.vlgmr.msra.gmra.mxu0 %vm381_vm2, %v380_v1 }
 0x12a   : > { %v402_v25 = vpop.f32.mrf.mxu0 }
 0x12b   : > { %405 = vst [vmem:[%s206_s17] sm:$0xff] %v402_v25  ;;  %v406_v26 = vmul.f32 %v402_v25, %v402_v25 }
 0x12c   : > { %729 = shalt.err (!%p726_p11)
}
 0x12d   : > { %579 = dma.vmem_to_hbm [thread:$0]  (%p900_p3), %s432_s20, 128, %s434_s21, %s415_s22   ;;  %v407_v27 = vrot.slane %v406_v26, 4 }
 0x12e   : > { %s442_s18 = scalar_lea.hbm %s1041_s3, %s855_s16  ;;  %s212_s23 = scalar_lea.vmem [#allocation8], %s927_s4 }
 0x12f   : > { %v408_v28 = vadd.f32 %v407_v27, %v406_v26  ;;  %s444_s10 = sshll.u32 %s212_s23, 4  ;;  %s446_s11 = sshll.u32 %s442_s18, 4  ;;  %s445_s10 = int_to_ptr.vmem [resolvable:$true] %s444_s10  ;;  %s447_s11 = int_to_ptr.hbm [resolvable:$true] %s446_s11 }
 0x130   : > { %s420_s17 = scalar_lea.sflag [#allocation9], %s927_s4  ;;  %s744_s24 = sshra.s32 %s447_s11, 4  ;;  %s745_s24 = int_to_ptr.hbm [resolvable:$true] %s744_s24 }
 0x131   : > { %v409_v30 = vrot.slane %v408_v28, 2  ;;  %s746_s20 = scalar_lea.hbm %s745_s24, 1  ;;  %s750_s16 = scalar_lea.hbm %s1041_s3, 2 }
 0x132   : > { %p747_p12 = scmp.ne.s32.totalorder %s745_s24, %s746_s20  ;;  %p751_p5 = scmp.lt.s32.totalorder %s745_s24, %s1041_s3 }
 0x133   : > { %v410_v31 = vadd.f32 %v409_v30, %v408_v28  ;;  %p752_p7 = scmp.lt.s32.totalorder %s750_s16, %s746_s20 }
 0x134   : > { %p748_p13 = pnand %p747_p12, %p900_p3 }
 0x135   : > { %v411_v32 = vrot.slane %v410_v31, 1  ;;  %p753_p1 = por %p752_p7, %p751_p5 }
 0x136   : > { %p749_p0 = pneg %p748_p13 }
 0x137   : > { %v412_v33 = vadd.f32 %v411_v32, %v410_v31 }
 0x138   : > { %p754_p4 = pnand %p753_p1, %p749_p0 }
 0x139   : > { %413 = vst [vmem:[%s212_s23] sm:$0x1] %v412_v33 }
 0x13a   : > { %757 = shalt.err (!%p754_p4)
}
 0x13b   : > { %580 = dma.vmem_to_hbm [thread:$0]  (%p900_p3), %s445_s10, 16, %s447_s11, %s420_s17  }
 0x13c PF: > { %s458_s4 = sand.u32 1, %s792_s12   ;;  %p1047_p8 = scmp.ge.s32.totalorder %s804_s15, 2 }
 0x13d   : > { %s459_s28 = scalar_lea.sflag [#allocation4], %s458_s4 }
 0x13e   : > { %p592_p9 = pnand %p1047_p8, %p869_p6 }
 0x140   : > { %p593_p10 = pneg %p592_p9 }
 0x142   : > { %783 = dma.done.wait (%p593_p10), %s459_s28, 128  }
 0x143   : > { %785 = vsyncadd (%p593_p10), %s459_s28, 4294967168  ;;  %s469_s5 = scalar_lea.sflag [#allocation9], %s458_s4 }
 0x144   : > { %787 = dma.done.wait (%p593_p10), %s469_s5, 16  }
 0x145   : > { %789 = vsyncadd (%p593_p10), %s469_s5, 4294967280  ;;  %p21_p3 = scmp.ge.s32.totalorder %s887_s26, 4   ;;  %s1048_s12 = smov %s796_s13 }
 0x146   : > { %s1049_s13 = smov %s800_s14  ;;  %s1050_s14 = smov %s896_s29 }
 0x147   : > { %s1051_s15 = smov %s887_s26  ;;  %23 = sbr.rel (!%p21_p3) target bundleno = 8 (0x8), region = 94 }
 0x14c   :  { %474 = vsyncpa [#allocation3], 1 }
 0x14d   :  { %476 = vsyncpa [#allocation3 + $0x1], 1 }
 0x14e   :  { %477 = vsyncpa [#allocation6], 1 }
 0x14f   :  { %478 = vsyncpa [#allocation4], 1 }
 0x150   :  { %480 = vsyncpa [#allocation4 + $0x1], 1 }
 0x151   :  { %481 = vsyncpa [#allocation9], 1 }
 0x152   :  { %483 = vsyncpa [#allocation9 + $0x1], 1 }

</bundles_post_ra>
